<compile_context>
chip_gen: v7x
topology: tpu7x:2x2x1
jax: 0.10.0
libtpu: 0.0.40
codegen_flags: <defaults>
</compile_context>

<pallas_src>
import jax
import jax.numpy as jnp
from jax.experimental import pallas as pl
from jax.experimental.pallas import tpu as pltpu


# Target f32 *working-set* bytes per block (input block is smaller for bf16/int8).
_TARGET_F32_BLOCK_BYTES = 8 * 1024 * 1024
_LANE_CANDIDATES = (512, 256, 128)


def _num_tensorcores() -> int:
    """Best-effort TensorCores-per-chip (2 on v7x-class chips, else 1)."""
    try:
        info = pltpu.get_tpu_info()
        for attr in ("num_cores", "num_tensorcores", "cores_per_chip", "core_count"):
            v = getattr(info, attr, None)
            if v:
                return max(1, min(4, int(v)))
    except Exception:
        pass
    try:
        dev = jax.devices()[0]
        v = getattr(dev, "num_cores", None)
        if v:
            return max(1, min(4, int(v)))
        kind = str(getattr(dev, "device_kind", "")).lower()
        if "v7" in kind or "tpu7" in kind:
            return 2
    except Exception:
        pass
    return 1


def _make_sum_kernel(tile_rows: int, lanes: int, steps_per_core: int,
                     num_blocks: int, guard: bool):
    """Partial-sum kernel: folds each block onto the resident (8, lanes) output."""
    # Two-level row-group reduction: 32-row groups give 4x more independent
    # accumulation chains (hides VALU add latency) when tile_rows allows it.
    g = 32 if tile_rows % 32 == 0 else 8

    def _accumulate(x_ref, o_ref):
        xb = x_ref[...].astype(jnp.float32)                       # widening cast
        t = xb.reshape(tile_rows // g, g, lanes).sum(axis=0)      # (g, lanes)
        o_ref[...] += t.reshape(g // 8, 8, lanes).sum(axis=0)     # (8, lanes)

    def kernel(x_ref, o_ref):
        s = pl.program_id(1)

        @pl.when(s == 0)
        def _():
            o_ref[...] = jnp.zeros_like(o_ref)

        if guard:
            # The grid has P * S slots but only num_blocks real blocks; skip the
            # (clamped, re-read) trailing slots so nothing is double counted.
            idx = pl.program_id(0) * steps_per_core + s

            @pl.when(idx < num_blocks)
            def _():
                _accumulate(x_ref, o_ref)
        else:
            _accumulate(x_ref, o_ref)

    return kernel


def pallas_full_mean(x: jnp.ndarray,
                     *,
                     target_f32_block_bytes: int = _TARGET_F32_BLOCK_BYTES,
                     num_parallel=None):
    """Mean over all elements of x, returned as a 0-d array (keepdim=False)."""
    orig_dtype = x.dtype
    out_dtype = orig_dtype if jnp.issubdtype(orig_dtype, jnp.floating) else jnp.float32

    n = int(x.size)
    if n == 0:
        return jnp.mean(x).astype(out_dtype)

    itemsize = x.dtype.itemsize
    # Sublane alignment for the (packed) input dtype: f32 -> 8, bf16 -> 16, int8 -> 32.
    row_align = {4: 8, 2: 16, 1: 32}.get(itemsize, 8)

    # Pick the widest lane count that divides n and leaves >= row_align full rows.
    lanes = 0
    for cand in _LANE_CANDIDATES:
        if n % cand == 0 and (n // cand) >= row_align:
            lanes = cand
            break

    lane_tail_sum = None
    if lanes:
        # Zero-pad-free path: pure reshape to a lane-dense 2-D view.
        rows = n // lanes
        x2d = x.reshape(rows, lanes)
    else:
        lanes = 128
        rows = n // lanes
        if rows < row_align:
            # Tiny tensor (< ~1-4 KiB): a kernel launch is pure overhead.
            return jnp.mean(x, dtype=jnp.float32).astype(out_dtype)
        flat = x.reshape(-1)
        n_main = rows * lanes
        # TODO(synk): this prefix slice materializes a copy for sizes where no
        # lane width in {512,256,128} divides n; a 1-D BlockSpec / manual-DMA
        # gather path would make this case zero-copy as well.
        x2d = flat[:n_main].reshape(rows, lanes)
        lane_tail_sum = jnp.sum(flat[n_main:], dtype=jnp.float32)

    # Block rows: target ~target_f32_block_bytes of f32 working set per block so
    # the widened cast of bf16/int8 blocks stays inside the VMEM budget.
    target_rows = max(row_align,
                      (target_f32_block_bytes // (lanes * 4)) // row_align * row_align)
    tile_rows = min(target_rows, (rows // row_align) * row_align)
    num_blocks = rows // tile_rows            # full blocks streamed through Pallas
    rows_covered = num_blocks * tile_rows     # trailing < tile_rows rows -> wrapper

    # Chip-aware 2-way split so v7x's two TensorCores each stream half the blocks.
    if num_parallel is None:
        num_parallel = _num_tensorcores()
    num_parallel = max(1, min(int(num_parallel), num_blocks))
    steps = -(-num_blocks // num_parallel)
    guard = (num_parallel * steps != num_blocks)

    if guard:
        in_index = lambda p, s: (jnp.minimum(p * steps + s, num_blocks - 1), 0)
    else:
        in_index = lambda p, s: (p * steps + s, 0)

    kernel = _make_sum_kernel(tile_rows, lanes, steps, num_blocks, guard)

    in_block_bytes = tile_rows * lanes * itemsize
    f32_block_bytes = tile_rows * lanes * 4
    # 2x-buffered input + widened f32 intermediate + headroom; explicit so large
    # blocks compile on v5e (16 MiB scoped default) and stay < v7x physical VMEM.
    vmem_limit = int(min(48 << 20,
                         max(16 << 20,
                             2 * in_block_bytes + f32_block_bytes + (8 << 20))))

    partials = pl.pallas_call(
        kernel,
        out_shape=jax.ShapeDtypeStruct((num_parallel * 8, lanes), jnp.float32),
        grid_spec=pltpu.PrefetchScalarGridSpec(
            num_scalar_prefetch=0,
            grid=(num_parallel, steps),
            in_specs=[pl.BlockSpec((tile_rows, lanes), in_index)],
            out_specs=pl.BlockSpec((8, lanes), lambda p, s: (p, 0)),
        ),
        compiler_params=pltpu.CompilerParams(
            dimension_semantics=("parallel", "arbitrary"),
            vmem_limit_bytes=vmem_limit,
        ),
        cost_estimate=pl.CostEstimate(
            flops=n, transcendentals=0,
            bytes_accessed=n * itemsize + num_parallel * 8 * lanes * 4,
        ),
    )(x2d)

    # Final cross-lane/sublane reduce + tails + divide, once, outside the kernel.
    total = jnp.sum(partials, dtype=jnp.float32)
    if rows_covered < rows:
        total = total + jnp.sum(x2d[rows_covered:, :], dtype=jnp.float32)
    if lane_tail_sum is not None:
        total = total + lane_tail_sum
    mean = total / jnp.float32(n)
    return mean.astype(out_dtype)


class MeanPallas:
    """JAX/Pallas equivalent of the torchkit `Mean` plugin layer."""

    def __init__(self, dim=None, keepdim: bool = False):
        self.dim = dim
        self.keepdim = keepdim

    def __call__(self, x: jnp.ndarray) -> jnp.ndarray:
        if self.dim is None:
            out = pallas_full_mean(x)
            if self.keepdim:
                out = out.reshape((1,) * x.ndim)
            return out
        # TODO(synk): per-axis (dim != None) reduction path is not lowered to
        # Pallas here; it falls back to jnp.mean.
        axis = self.dim if isinstance(self.dim, int) else tuple(self.dim)
        return jnp.mean(x, axis=axis, keepdims=self.keepdim)


if __name__ == "__main__":
    key = jax.random.PRNGKey(0)

    # 1) Module defaults on an NCHW image batch (lane-aligned, pad-free path).
    x = jax.random.normal(key, (2, 4, 16, 16), dtype=jnp.float32)
    layer = MeanPallas(dim=None, keepdim=False)
    out = jax.block_until_ready(layer(x))
    ref = jnp.mean(x)
    assert out.shape == ref.shape == ()
    assert jnp.allclose(out, ref, atol=1e-5, rtol=1e-4), (out, ref)

    # 2) Multi-block accumulation with a forced 2-way "parallel" split (small
    #    block target so the grid has several reduction steps at test size).
    x2 = jax.random.normal(jax.random.PRNGKey(1), (4, 8, 32, 32), dtype=jnp.float32)
    out2 = jax.block_until_ready(
        pallas_full_mean(x2, target_f32_block_bytes=16 * 512 * 4, num_parallel=2))
    ref2 = jnp.mean(x2)
    assert out2.shape == ref2.shape == ()
    assert jnp.allclose(out2, ref2, atol=1e-5, rtol=1e-4), (out2, ref2)

    # 3) Ragged size (128 does not divide n): prefix blocks go through Pallas,
    #    the lane/row tails are summed in the wrapper, and the odd block count
    #    with num_parallel=2 exercises the clamped-index + pl.when guard path.
    x3 = jax.random.normal(jax.random.PRNGKey(2), (3, 5, 16, 17), dtype=jnp.float32)
    out3 = jax.block_until_ready(
        pallas_full_mean(x3, target_f32_block_bytes=8 * 128 * 4, num_parallel=2))
    ref3 = jnp.mean(x3)
    assert out3.shape == ref3.shape == ()
    assert jnp.allclose(out3, ref3, atol=1e-5, rtol=1e-4), (out3, ref3)

    # 4) keepdim=True path.
    out4 = jax.block_until_ready(MeanPallas(dim=None, keepdim=True)(x))
    assert out4.shape == (1, 1, 1, 1)
    assert jnp.allclose(out4.reshape(()), ref, atol=1e-5, rtol=1e-4)

    print("KERNEL_OK")
</pallas_src>

<mosaic_0001>
module attributes {stable_mosaic.version = 11 : i64} {
  func.func @kernel(%arg0: i32, %arg1: i32, %arg2: memref<8x256xf32, #tpu.memory_space<vmem>>, %arg3: memref<8x256xf32, #tpu.memory_space<vmem>>) attributes {dimension_semantics = [#tpu.dimension_semantics<parallel>, #tpu.dimension_semantics<arbitrary>], iteration_bounds = array<i64: 1, 1>, scalar_prefetch = 0 : i64, scratch_operands = 0 : i64, tpu.core_type = #tpu.core_type<tc>, window_params = [{transform_indices = @transform_0, window_bounds = array<i64: 8, 256>}, {transform_indices = @transform_1, window_bounds = array<i64: 8, 256>}]} {
    %c0_i32 = arith.constant 0 : i32
    %0 = arith.cmpi eq, %arg1, %c0_i32 : i32
    %1 = arith.extui %0 : i1 to i32
    %c0_i32_0 = arith.constant 0 : i32
    %2 = arith.cmpi ne, %1, %c0_i32_0 : i32
    scf.if %2 {
      %cst_7 = arith.constant 0.000000e+00 : f32
      %11 = vector.broadcast %cst_7 : f32 to vector<8x256xf32>
      %c0_8 = arith.constant 0 : index
      %c0_9 = arith.constant 0 : index
      %12 = vector.load %arg3[%c0_8, %c0_9] : memref<8x256xf32, #tpu.memory_space<vmem>>, vector<8x256xf32>
      tpu.vector_store %arg3[%c0_8, %c0_9], %11 {strides = array<i32>} : memref<8x256xf32, #tpu.memory_space<vmem>>, vector<8x256xf32>,
    } else {
    }
    %c0 = arith.constant 0 : index
    %c0_1 = arith.constant 0 : index
    %3 = vector.load %arg2[%c0, %c0_1] : memref<8x256xf32, #tpu.memory_space<vmem>>, vector<8x256xf32>
    %4 = vector.shape_cast %3 : vector<8x256xf32> to vector<1x8x256xf32>
    %cst = arith.constant dense<0.000000e+00> : vector<8x256xf32>
    %5 = vector.multi_reduction <add>, %4, %cst [0] : vector<1x8x256xf32> to vector<8x256xf32>
    %c0_2 = arith.constant 0 : index
    %c0_3 = arith.constant 0 : index
    %6 = vector.load %arg3[%c0_2, %c0_3] : memref<8x256xf32, #tpu.memory_space<vmem>>, vector<8x256xf32>
    %7 = vector.shape_cast %5 : vector<8x256xf32> to vector<1x8x256xf32>
    %cst_4 = arith.constant dense<0.000000e+00> : vector<8x256xf32>
    %8 = vector.multi_reduction <add>, %7, %cst_4 [0] : vector<1x8x256xf32> to vector<8x256xf32>
    %9 = arith.addf %6, %8 : vector<8x256xf32>
    %c0_5 = arith.constant 0 : index
    %c0_6 = arith.constant 0 : index
    %10 = vector.load %arg3[%c0_5, %c0_6] : memref<8x256xf32, #tpu.memory_space<vmem>>, vector<8x256xf32>
    tpu.vector_store %arg3[%c0_5, %c0_6], %9 {strides = array<i32>} : memref<8x256xf32, #tpu.memory_space<vmem>>, vector<8x256xf32>,
    return
  }
  func.func @transform_0(%arg0: i32, %arg1: i32) -> (i32, i32) {
    %c1_i32 = arith.constant 1 : i32
    %0 = arith.muli %arg0, %c1_i32 : i32
    %1 = arith.addi %0, %arg1 : i32
    %c0_i32 = arith.constant 0 : i32
    %c0_i32_0 = arith.constant 0 : i32
    return %1, %c0_i32 : i32, i32
  }
  func.func @transform_1(%arg0: i32, %arg1: i32) -> (i32, i32) {
    %c0_i32 = arith.constant 0 : i32
    %c0_i32_0 = arith.constant 0 : i32
    return %arg0, %c0_i32 : i32, i32
  }
}

</mosaic_0001>

<bundles_post_ra>
// kernel: tpu_custom_call.1
= control target key start
LH: loop header
LB: loop body
LE: loop exit
PB: predicated region body
PF: predicated region fallthrough
CT: control target
= control target key end

     0   :  { %6 = vsyncpa [#allocation3], 0  ;;  %s146_s0 = inlined_call_operand.hbm [shape: f32[8,256], index: 0, kind: input, shape index: {}]   ;;  %s147_s1 = inlined_call_operand.hbm [shape: f32[8,256], index: 1, kind: output, shape index: {}]  }
   0x1   :  { %7 = vsyncpa [#allocation4], 0  ;;  %s110_s6 = smov [#allocation2]   ;;  %s62_s10 = scalar_lea.hbm %s146_s0, 256 }
   0x2   :  { %s18_s7 = sshll.u32 %s110_s6, 4  ;;  %p63_p0 = scmp.ne.s32.totalorder %s146_s0, %s62_s10  ;;  %s19_s7 = int_to_ptr.vmem [resolvable:$true] %s18_s7 }
   0x3   :  { %p66_p1 = scmp.lt.u32.totalorder %s62_s10, %s146_s0 }
   0x5   :  { %p68_p2 = pnand %p66_p1, %p63_p0 }
   0x7   :  { %71 = shalt.err (!%p68_p2)
}
   0x8   :  { %s72_s15 = scalar_lea.vmem %s19_s7, 256  ;;  %p77_p4 = scmp.lt.s32.totalorder %s19_s7, %s19_s7 }
   0x9   :  { %p73_p3 = scmp.ne.s32.totalorder %s19_s7, %s72_s15  ;;  %p78_p5 = scmp.lt.s32.totalorder %s72_s15, %s72_s15 }
   0xb   :  { %p79_p6 = por %p78_p5, %p77_p4 }
   0xd   :  { %p80_p7 = pnand %p79_p6, %p73_p3 }
   0xf   :  { %83 = shalt.err (!%p80_p7)
}
  0x10   :  { %21 = dma.hbm_to_vmem [thread:$0]  %s146_s0, 256, %s19_s7, [#allocation3]  }
  0x11   :  { %106 = dma.done.wait [#allocation3], 256  }
  0x12   :  { %107 = vsyncadd [#allocation3], 4294967040  ;;  %s111_s18 = smov [#allocation5]   ;;  %v32_v0 = vld [vmem:[#allocation2] sm:$0xff]  ;;  %v33_v1 = vld [vmem:[#allocation2 + $0x8] sm:$0xff] }
  0x13   :  { %s50_s19 = sshll.u32 %s111_s18, 4  ;;  %42 = vst [vmem:[#allocation5] sm:$0xff] %v32_v0  ;;  %43 = vst [vmem:[#allocation5 + $0x8] sm:$0xff] %v33_v1  ;;  %s51_s19 = int_to_ptr.vmem [resolvable:$true] %s50_s19 }
  0x14   :  { %s84_s20 = scalar_lea.vmem %s51_s19, 256  ;;  %p89_p9 = scmp.lt.s32.totalorder %s51_s19, %s51_s19 }
  0x15   :  { %p85_p8 = scmp.ne.s32.totalorder %s51_s19, %s84_s20  ;;  %p90_p10 = scmp.lt.s32.totalorder %s84_s20, %s84_s20 }
  0x17   :  { %p91_p11 = por %p90_p10, %p89_p9 }
  0x19   :  { %p92_p12 = pnand %p91_p11, %p85_p8 }
  0x1b   :  { %95 = shalt.err (!%p92_p12)
}
  0x1c   :  { %s96_s0 = scalar_lea.hbm %s147_s1, 256 }
  0x1d   :  { %p97_p13 = scmp.ne.s32.totalorder %s147_s1, %s96_s0  ;;  %p100_p0 = scmp.lt.u32.totalorder %s96_s0, %s147_s1 }
  0x1f   :  { %p102_p1 = pnand %p100_p0, %p97_p13 }
  0x21   :  { %105 = shalt.err (!%p102_p1)
}
  0x22   :  { %53 = dma.vmem_to_hbm [thread:$0]  %s51_s19, 256, %s147_s1, [#allocation4]  }
  0x23   :  { %108 = dma.done.wait [#allocation4], 256  }
  0x24   :  { %109 = vsyncadd [#allocation4], 4294967040 }
  0x25   :  { %57 = vsyncpa [#allocation3], 1 }
  0x26   :  { %58 = vsyncpa [#allocation4], 1 }

</bundles_post_ra>
